<compile_context>
chip_gen: v6e
topology: v6e:2x2x1
jax: 0.10.0
libtpu: 0.0.40
codegen_flags: <defaults>
</compile_context>

<pallas_src>
import jax
import jax.numpy as jnp
from jax.experimental import pallas as pl
from jax.experimental.pallas import tpu as pltpu

INPUT_SIZE = 1000
HIDDEN_SIZE = 100
OUTPUT_SIZE = 10
BATCH_SIZE = 64

LANE = 128


def _round_up(n, m):
    return ((n + m - 1) // m) * m


def mlp_kernel(x_ref, w1_ref, b1_ref, w2_ref, b2_ref, o_ref):
    # linear1: x @ W1 + b1 (bf16 operands, f32 accumulation), then ReLU.
    h = jnp.dot(x_ref[...], w1_ref[...], preferred_element_type=jnp.float32)
    h = jnp.maximum(h + b1_ref[...], 0.0)          # (B, Hp) + (1, Hp) broadcast
    # linear2: h @ W2 + b2 — cast activations back to bf16 for the MXU.
    y = jnp.dot(h.astype(jnp.bfloat16), w2_ref[...],
                preferred_element_type=jnp.float32)
    o_ref[...] = (y + b2_ref[...]).astype(o_ref.dtype)


def net_forward(x, w1, b1, w2, b2):
    """y = relu(x @ w1 + b1) @ w2 + b2, computed in one Pallas call.

    Weights are stored [in, out] (transpose of PyTorch's [out, in]).
    """
    B, f_in = x.shape
    hid = w1.shape[1]
    f_out = w2.shape[1]
    in_p = _round_up(f_in, LANE)    # 1000 -> 1024
    hid_p = _round_up(hid, LANE)    # 100  -> 128
    out_p = _round_up(f_out, LANE)  # 10   -> 128

    # Zero-pad to lane-dense shapes and cast the heavy operands to bf16.
    x_p = jnp.pad(x, ((0, 0), (0, in_p - f_in))).astype(jnp.bfloat16)
    w1_p = jnp.pad(w1, ((0, in_p - f_in), (0, hid_p - hid))).astype(jnp.bfloat16)
    b1_p = jnp.pad(b1, ((0, 0), (0, hid_p - hid))).astype(jnp.float32)
    w2_p = jnp.pad(w2, ((0, hid_p - hid), (0, out_p - f_out))).astype(jnp.bfloat16)
    b2_p = jnp.pad(b2, ((0, 0), (0, out_p - f_out))).astype(jnp.float32)

    vmem = pl.BlockSpec(memory_space=pltpu.MemorySpace.VMEM)
    y_p = pl.pallas_call(
        mlp_kernel,
        out_shape=jax.ShapeDtypeStruct((B, out_p), jnp.float32),
        in_specs=[vmem, vmem, vmem, vmem, vmem],
        out_specs=vmem,
    )(x_p, w1_p, b1_p, w2_p, b2_p)

    # Padded output columns are exactly zero (zero-padded w2 cols / b2); slice off.
    return y_p[:, :f_out].astype(x.dtype)


def init_params(key, input_size, hidden_size, output_size):
    # Deterministic init mimicking nn.Linear's U(-1/sqrt(fan_in), 1/sqrt(fan_in)).
    k1, k2, k3, k4 = jax.random.split(key, 4)
    bound1 = 1.0 / jnp.sqrt(jnp.float32(input_size))
    bound2 = 1.0 / jnp.sqrt(jnp.float32(hidden_size))
    # Stored as [in, out] (transpose of PyTorch's [out, in]) for x @ W.
    w1 = jax.random.uniform(k1, (input_size, hidden_size), jnp.float32, -bound1, bound1)
    b1 = jax.random.uniform(k2, (1, hidden_size), jnp.float32, -bound1, bound1)
    w2 = jax.random.uniform(k3, (hidden_size, output_size), jnp.float32, -bound2, bound2)
    b2 = jax.random.uniform(k4, (1, output_size), jnp.float32, -bound2, bound2)
    return w1, b1, w2, b2


if __name__ == "__main__":
    key = jax.random.PRNGKey(0)
    kx, kp = jax.random.split(key)
    x = jax.random.normal(kx, (BATCH_SIZE, INPUT_SIZE), jnp.float32)
    w1, b1, w2, b2 = init_params(kp, INPUT_SIZE, HIDDEN_SIZE, OUTPUT_SIZE)

    y = net_forward(x, w1, b1, w2, b2)
    jax.block_until_ready(y)
    assert y.shape == (BATCH_SIZE, OUTPUT_SIZE)

    # Reference with the same bf16 rounding applied (kernel accumulates in f32).
    xb = x.astype(jnp.bfloat16).astype(jnp.float32)
    w1b = w1.astype(jnp.bfloat16).astype(jnp.float32)
    w2b = w2.astype(jnp.bfloat16).astype(jnp.float32)
    h_ref = jnp.maximum(xb @ w1b + b1, 0.0)
    h_ref = h_ref.astype(jnp.bfloat16).astype(jnp.float32)
    ref = h_ref @ w2b + b2
    assert jnp.allclose(y, ref, atol=5e-3, rtol=5e-3), (
        float(jnp.max(jnp.abs(y - ref))))

    # Loose sanity check against the full-precision f32 math as well.
    ref_f32 = jnp.maximum(x @ w1 + b1, 0.0) @ w2 + b2
    assert jnp.allclose(y, ref_f32, atol=1e-1, rtol=1e-1)

    print("KERNEL_OK")
</pallas_src>

<mosaic_0001>
module attributes {stable_mosaic.version = 11 : i64} {
  func.func @mlp_kernel(%arg0: memref<64x1024xbf16, #tpu.memory_space<vmem>>, %arg1: memref<1024x128xbf16, #tpu.memory_space<vmem>>, %arg2: memref<1x128xf32, #tpu.memory_space<vmem>>, %arg3: memref<128x128xbf16, #tpu.memory_space<vmem>>, %arg4: memref<1x128xf32, #tpu.memory_space<vmem>>, %arg5: memref<64x128xf32, #tpu.memory_space<vmem>>) attributes {dimension_semantics = [], scalar_prefetch = 0 : i64, scratch_operands = 0 : i64, tpu.core_type = #tpu.core_type<tc>} {
    %c0 = arith.constant 0 : index
    %c0_0 = arith.constant 0 : index
    %0 = vector.load %arg0[%c0, %c0_0] : memref<64x1024xbf16, #tpu.memory_space<vmem>>, vector<64x1024xbf16>
    %c0_1 = arith.constant 0 : index
    %c0_2 = arith.constant 0 : index
    %1 = vector.load %arg1[%c0_1, %c0_2] : memref<1024x128xbf16, #tpu.memory_space<vmem>>, vector<1024x128xbf16>
    %cst = arith.constant dense<0.000000e+00> : vector<64x128xf32>
    %2 = tpu.matmul %0, %1, %cst {dimension_numbers = #tpu.dot_dimension_numbers<[1], [0], [0], [1], [0, 0, 1, 1], [], []>} : vector<64x1024xbf16>, vector<1024x128xbf16>, vector<64x128xf32> -> vector<64x128xf32>
    %c0_3 = arith.constant 0 : index
    %c0_4 = arith.constant 0 : index
    %3 = vector.load %arg2[%c0_3, %c0_4] : memref<1x128xf32, #tpu.memory_space<vmem>>, vector<1x128xf32>
    %4 = vector.broadcast %3 : vector<1x128xf32> to vector<64x128xf32>
    %5 = arith.addf %2, %4 : vector<64x128xf32>
    %cst_5 = arith.constant 0.000000e+00 : f32
    %6 = vector.broadcast %cst_5 : f32 to vector<64x128xf32>
    %7 = arith.maximumf %5, %6 : vector<64x128xf32>
    %8 = arith.truncf %7 : vector<64x128xf32> to vector<64x128xbf16>
    %c0_6 = arith.constant 0 : index
    %c0_7 = arith.constant 0 : index
    %9 = vector.load %arg3[%c0_6, %c0_7] : memref<128x128xbf16, #tpu.memory_space<vmem>>, vector<128x128xbf16>
    %cst_8 = arith.constant dense<0.000000e+00> : vector<64x128xf32>
    %10 = tpu.matmul %8, %9, %cst_8 {dimension_numbers = #tpu.dot_dimension_numbers<[1], [0], [0], [1], [0, 0, 1, 1], [], []>} : vector<64x128xbf16>, vector<128x128xbf16>, vector<64x128xf32> -> vector<64x128xf32>
    %c0_9 = arith.constant 0 : index
    %c0_10 = arith.constant 0 : index
    %11 = vector.load %arg4[%c0_9, %c0_10] : memref<1x128xf32, #tpu.memory_space<vmem>>, vector<1x128xf32>
    %12 = vector.broadcast %11 : vector<1x128xf32> to vector<64x128xf32>
    %13 = arith.addf %10, %12 : vector<64x128xf32>
    %c0_11 = arith.constant 0 : index
    %c0_12 = arith.constant 0 : index
    %14 = vector.load %arg5[%c0_11, %c0_12] : memref<64x128xf32, #tpu.memory_space<vmem>>, vector<64x128xf32>
    tpu.vector_store %arg5[%c0_11, %c0_12], %13 {strides = array<i32>} : memref<64x128xf32, #tpu.memory_space<vmem>>, vector<64x128xf32>,
    return
  }
}

</mosaic_0001>

<bundles_post_ra>
// kernel: tpu_custom_call.1
= control target key start
LH: loop header
LB: loop body
LE: loop exit
PB: predicated region body
PF: predicated region fallthrough
CT: control target
= control target key end

     0   :  { %10 = vsyncpa [#allocation3], 0  ;;  %s1798_s0 = inlined_call_operand.hbm [shape: bf16[64,1024], index: 0, kind: input, shape index: {}]   ;;  %s1799_s1 = inlined_call_operand.hbm [shape: bf16[1024,128], index: 1, kind: input, shape index: {}]   ;;  %s1800_s2 = inlined_call_operand.vmem [shape: f32[1,128], index: 2, kind: input, shape index: {}]   ;;  %s1801_s3 = inlined_call_operand.hbm [shape: bf16[128,128], index: 3, kind: input, shape index: {}]   ;;  %s1802_s4 = inlined_call_operand.vmem [shape: f32[1,128], index: 4, kind: input, shape index: {}]   ;;  %s1803_s5 = inlined_call_operand.hbm [shape: f32[64,128], index: 5, kind: output, shape index: {}]  }
   0x1   :  { %11 = vsyncpa [#allocation6], 0 }
   0x2   :  { %12 = vsyncpa [#allocation4], 0  ;;  %s1694_s18 = smov [#allocation5]  }
   0x3   :  { %s30_s19 = sshll.u32 %s1694_s18, 4  ;;  %s31_s19 = int_to_ptr.vmem [resolvable:$true] %s30_s19 }
   0x4   :  { %s1616_s20 = scalar_lea.vmem %s31_s19, 8192  ;;  %p1621_p1 = scmp.lt.s32.totalorder %s31_s19, %s31_s19 }
   0x5   :  { %p1617_p0 = scmp.ne.s32.totalorder %s31_s19, %s1616_s20  ;;  %p1622_p2 = scmp.lt.s32.totalorder %s1616_s20, %s1616_s20 }
   0x7   :  { %p1623_p3 = por %p1622_p2, %p1621_p1 }
   0x9   :  { %p1624_p4 = pnand %p1623_p3, %p1617_p0 }
   0xb   :  { %1627 = shalt.err (!%p1624_p4)
}
   0xc   :  { %s1695_s21 = smov 64   ;;  %s1696_s22 = smov 4  }
   0xd   :  { %36 = dma.hbm_to_vmem [thread:$0]  %s1799_s1, 8192, %s31_s19, [#allocation6], %s1695_s21, %s1695_s21, %s1696_s22  }
   0xe   :  { %s1697_s25 = smov [#allocation2]  }
   0xf   :  { %s18_s26 = sshll.u32 %s1697_s25, 4  ;;  %s19_s26 = int_to_ptr.vmem [resolvable:$true] %s18_s26 }
  0x10   :  { %s1636_s27 = scalar_lea.vmem %s19_s26, 4096  ;;  %p1641_p6 = scmp.lt.s32.totalorder %s19_s26, %s19_s26 }
  0x11   :  { %p1637_p5 = scmp.ne.s32.totalorder %s19_s26, %s1636_s27  ;;  %p1642_p7 = scmp.lt.s32.totalorder %s1636_s27, %s1636_s27 }
  0x13   :  { %p1643_p8 = por %p1642_p7, %p1641_p6 }
  0x15   :  { %p1644_p9 = pnand %p1643_p8, %p1637_p5 }
  0x17   :  { %1647 = shalt.err (!%p1644_p9)
}
  0x18   :  { %s1698_s28 = smov 512   ;;  %s1699_s29 = smov 32  }
  0x19   :  { %24 = dma.hbm_to_vmem [thread:$0]  %s1798_s0, 4096, %s19_s26, [#allocation3], %s1698_s28, %s1698_s28, %s1699_s29  }
  0x1a   :  { %s1700_s7 = smov [#allocation7]  }
  0x1b   :  { %s44_s8 = sshll.u32 %s1700_s7, 4  ;;  %s45_s8 = int_to_ptr.vmem [resolvable:$true] %s44_s8 }
  0x1c   :  { %s1656_s1 = scalar_lea.vmem %s45_s8, 1024  ;;  %p1661_p11 = scmp.lt.s32.totalorder %s45_s8, %s45_s8 }
  0x1d   :  { %p1657_p10 = scmp.ne.s32.totalorder %s45_s8, %s1656_s1  ;;  %p1662_p12 = scmp.lt.s32.totalorder %s1656_s1, %s1656_s1 }
  0x1f   :  { %p1663_p13 = por %p1662_p12, %p1661_p11 }
  0x21   :  { %p1664_p0 = pnand %p1663_p13, %p1657_p10 }
  0x23   :  { %1667 = shalt.err (!%p1664_p0)
}
  0x24   :  { %50 = dma.hbm_to_vmem [thread:$0]  %s1801_s3, 1024, %s45_s8, [#allocation6], %s1695_s21, %s1695_s21, %s1696_s22  }
  0x25   :  { %1688 = dma.done.wait [#allocation3], 4096  }
  0x26   :  { %1689 = vsyncadd [#allocation3], 4294963200 }
  0x27   :  { %1690 = dma.done.wait [#allocation6], 9216  }
  0x28   :  { %1691 = vsyncadd [#allocation6], 4294958080  ;;  %v1536_v0 = vld [vmem:[#allocation5 + $0x78] sm:$0xff]   ;;  %v1540_v4 = vld [vmem:[#allocation5 + $0x70] sm:$0xff]   ;;  %s1701_s12 = smov [#allocation8]  }
  0x29   :  { %v1537_v1 = vld [vmem:[#allocation5 + $0xf8] sm:$0xff]   ;;  %1314 = vmatprep.subr.bf16.mxu0 %v1536_v0  ;;  %v1541_v5 = vld [vmem:[#allocation5 + $0xf0] sm:$0xff]   ;;  %v1544_v8 = vld [vmem:[#allocation5 + $0x68] sm:$0xff]  }
  0x2a   :  { %v1538_v2 = vld [vmem:[#allocation5 + $0x38] sm:$0xff]   ;;  %1354 = vmatprep.subr.bf16.mxu1 %v1537_v1  ;;  %v1542_v6 = vld [vmem:[#allocation5 + $0x30] sm:$0xff]   ;;  %v1545_v9 = vld [vmem:[#allocation5 + $0xe8] sm:$0xff]  }
  0x2b   :  { %v1539_v3 = vld [vmem:[#allocation5 + $0xb8] sm:$0xff]   ;;  %1315 = vmatpush3.bf16.msra.mxu0 %v1538_v2  ;;  %v1543_v7 = vld [vmem:[#allocation5 + $0xb0] sm:$0xff]   ;;  %v1546_v10 = vld [vmem:[#allocation5 + $0x28] sm:$0xff]  }
  0x2c   :  { %1355 = vmatpush3.bf16.msra.mxu1 %v1539_v3  ;;  %1316 = vmatprep.subr.bf16.mxu0 %v1540_v4  ;;  %v1547_v11 = vld [vmem:[#allocation5 + $0xa8] sm:$0xff]   ;;  %v1548_v12 = vld [vmem:[#allocation5 + $0x60] sm:$0xff]   ;;  %v1552_v16 = vld [vmem:[#allocation5 + $0x58] sm:$0xff]  }
  0x2d   :  { %1356 = vmatprep.subr.bf16.mxu1 %v1541_v5  ;;  %v1549_v13 = vld [vmem:[#allocation5 + $0xe0] sm:$0xff]   ;;  %v1553_v17 = vld [vmem:[#allocation5 + $0xd8] sm:$0xff]   ;;  %v1556_v20 = vld [vmem:[#allocation5 + $0x50] sm:$0xff]  }
  0x2e   :  { %v1550_v14 = vld [vmem:[#allocation5 + $0x20] sm:$0xff]   ;;  %v1554_v18 = vld [vmem:[#allocation5 + $0x18] sm:$0xff]   ;;  %v1557_v21 = vld [vmem:[#allocation5 + $0xd0] sm:$0xff]  }
  0x2f   :  { %1317 = vmatpush3.bf16.msra.mxu0 %v1542_v6  ;;  %v1551_v15 = vld [vmem:[#allocation5 + $0xa0] sm:$0xff]   ;;  %v1555_v19 = vld [vmem:[#allocation5 + $0x98] sm:$0xff]   ;;  %v1558_v22 = vld [vmem:[#allocation5 + $0x10] sm:$0xff]  }
  0x30   :  { %1357 = vmatpush3.bf16.msra.mxu1 %v1543_v7  ;;  %1318 = vmatprep.subr.bf16.mxu0 %v1544_v8  ;;  %v1559_v23 = vld [vmem:[#allocation5 + $0x90] sm:$0xff]   ;;  %v1560_v24 = vld [vmem:[#allocation5 + $0x48] sm:$0xff]   ;;  %v1564_v28 = vld [vmem:[#allocation5 + $0x40] sm:$0xff]  }
  0x31   :  { %1358 = vmatprep.subr.bf16.mxu1 %v1545_v9  ;;  %v1561_v25 = vld [vmem:[#allocation5 + $0xc8] sm:$0xff]   ;;  %v1565_v29 = vld [vmem:[#allocation5 + $0xc0] sm:$0xff]   ;;  %v1568_v40 = vld [vmem:[#allocation5 + $0x178] sm:$0xff]  }
  0x32   :  { %v1562_v26 = vld [vmem:[#allocation5 + $0x8] sm:$0xff]   ;;  %v1566_v30 = vld [vmem:[#allocation5] sm:$0xff]   ;;  %v1569_v41 = vld [vmem:[#allocation5 + $0x1f8] sm:$0xff]  }
  0x33   :  { %1319 = vmatpush3.bf16.msra.mxu0 %v1546_v10  ;;  %v1563_v27 = vld [vmem:[#allocation5 + $0x88] sm:$0xff]   ;;  %v1567_v31 = vld [vmem:[#allocation5 + $0x80] sm:$0xff]   ;;  %v1570_v42 = vld [vmem:[#allocation5 + $0x138] sm:$0xff]  }
  0x34   :  { %1359 = vmatpush3.bf16.msra.mxu1 %v1547_v11  ;;  %1320 = vmatprep.subr.bf16.mxu0 %v1548_v12  ;;  %v63_v32 = vld [vmem:[#allocation2] sm:$0xff]  ;;  %v64_v34 = vld [vmem:[#allocation2 + $0x8] sm:$0xff]  ;;  %v1571_v43 = vld [vmem:[#allocation5 + $0x1b8] sm:$0xff]  }
  0x35   :  { %1360 = vmatprep.subr.bf16.mxu1 %v1549_v13  ;;  %v67_v33 = vld [vmem:[#allocation2 + $0x20] sm:$0xff]  ;;  %v68_v37 = vld [vmem:[#allocation2 + $0x28] sm:$0xff]  ;;  %v1572_v44 = vld [vmem:[#allocation5 + $0x170] sm:$0xff]  }
  0x36   :  { %v1209_v35 = vcombine.low %v63_v32, %v67_v33  ;;  %v1210_v36 = vcombine.high %v63_v32, %v67_v33  ;;  %v1211_v38 = vcombine.low %v64_v34, %v68_v37  ;;  %v1212_v39 = vcombine.high %v64_v34, %v68_v37  ;;  %v1573_v45 = vld [vmem:[#allocation5 + $0x1f0] sm:$0xff]   ;;  %v71_v48 = vld [vmem:[#allocation2 + $0x40] sm:$0xff]  ;;  %v72_v51 = vld [vmem:[#allocation2 + $0x48] sm:$0xff] }
  0x37   :  { %1321 = vmatpush3.bf16.msra.mxu0 %v1550_v14  ;;  %v1574_v46 = vld [vmem:[#allocation5 + $0x130] sm:$0xff]   ;;  %v75_v49 = vld [vmem:[#allocation2 + $0x60] sm:$0xff]  ;;  %v76_v52 = vld [vmem:[#allocation2 + $0x68] sm:$0xff] }
  0x38   :  { %1361 = vmatpush3.bf16.msra.mxu1 %v1551_v15  ;;  %1322 = vmatprep.subr.bf16.mxu0 %v1552_v16  ;;  %v1575_v47 = vld [vmem:[#allocation5 + $0x1b0] sm:$0xff]   ;;  %v1218_v50 = vcombine.high %v71_v48, %v75_v49  ;;  %v1217_v53 = vcombine.low %v71_v48, %v75_v49  ;;  %v1220_v54 = vcombine.high %v72_v51, %v76_v52  ;;  %v1576_v56 = vld [vmem:[#allocation5 + $0x168] sm:$0xff]   ;;  %v1580_v60 = vld [vmem:[#allocation5 + $0x160] sm:$0xff]  }
  0x39   :  { %1362 = vmatprep.subr.bf16.mxu1 %v1553_v17  ;;  %806 = vmatprep.mubr.bf16.mxu0 %v1210_v36  ;;  %v1219_v55 = vcombine.low %v72_v51, %v76_v52  ;;  %v1577_v57 = vld [vmem:[#allocation5 + $0x1e8] sm:$0xff]   ;;  %v1581_v61 = vld [vmem:[#allocation5 + $0x1e0] sm:$0xff]   ;;  %v1584_v8 = vld [vmem:[#allocation5 + $0x158] sm:$0xff]  }
  0x3a   :  { %871 = vmatprep.mubr.bf16.mxu1 %v1212_v39  ;;  %v1578_v58 = vld [vmem:[#allocation5 + $0x128] sm:$0xff]   ;;  %v1582_v62 = vld [vmem:[#allocation5 + $0x120] sm:$0xff]   ;;  %v1585_v9 = vld [vmem:[#allocation5 + $0x1d8] sm:$0xff]  }
  0x3b   :  { %1323 = vmatpush3.bf16.msra.mxu0 %v1554_v18  ;;  %v1579_v59 = vld [vmem:[#allocation5 + $0x1a8] sm:$0xff]   ;;  %v1583_v63 = vld [vmem:[#allocation5 + $0x1a0] sm:$0xff]   ;;  %v1586_v10 = vld [vmem:[#allocation5 + $0x118] sm:$0xff]  }
  0x3c   :  { %1363 = vmatpush3.bf16.msra.mxu1 %v1555_v19  ;;  %1324 = vmatprep.subr.bf16.mxu0 %v1556_v20  ;;  %v79_v0 = vld [vmem:[#allocation2 + $0x80] sm:$0xff]  ;;  %v80_v2 = vld [vmem:[#allocation2 + $0x88] sm:$0xff]  ;;  %v1587_v11 = vld [vmem:[#allocation5 + $0x198] sm:$0xff]  }
  0x3d   :  { %1364 = vmatprep.subr.bf16.mxu1 %v1557_v21  ;;  %v83_v1 = vld [vmem:[#allocation2 + $0xa0] sm:$0xff]  ;;  %v84_v3 = vld [vmem:[#allocation2 + $0xa8] sm:$0xff]  ;;  %v1588_v12 = vld [vmem:[#allocation5 + $0x150] sm:$0xff]  }
  0x3e   :  { %v1226_v4 = vcombine.high %v79_v0, %v83_v1  ;;  %v1228_v5 = vcombine.high %v80_v2, %v84_v3  ;;  %v1225_v6 = vcombine.low %v79_v0, %v83_v1  ;;  %v1227_v7 = vcombine.low %v80_v2, %v84_v3  ;;  %v1589_v13 = vld [vmem:[#allocation5 + $0x1d0] sm:$0xff]   ;;  %v87_v16 = vld [vmem:[#allocation2 + $0xc0] sm:$0xff]  ;;  %v88_v18 = vld [vmem:[#allocation2 + $0xc8] sm:$0xff] }
  0x3f   :  { %1325 = vmatpush3.bf16.msra.mxu0 %v1558_v22  ;;  %v1590_v14 = vld [vmem:[#allocation5 + $0x110] sm:$0xff]   ;;  %v91_v17 = vld [vmem:[#allocation2 + $0xe0] sm:$0xff]  ;;  %v92_v20 = vld [vmem:[#allocation2 + $0xe8] sm:$0xff] }
  0x40   :  { %1365 = vmatpush3.bf16.msra.mxu1 %v1559_v23  ;;  %1326 = vmatprep.subr.bf16.mxu0 %v1560_v24  ;;  %v1591_v15 = vld [vmem:[#allocation5 + $0x190] sm:$0xff]   ;;  %v1234_v19 = vcombine.high %v87_v16, %v91_v17  ;;  %v1233_v21 = vcombine.low %v87_v16, %v91_v17  ;;  %v1236_v22 = vcombine.high %v88_v18, %v92_v20  ;;  %v1592_v24 = vld [vmem:[#allocation5 + $0x148] sm:$0xff]   ;;  %v66_v36 = vld [vmem:[#allocation2 + $0x18] sm:$0xff] }
  0x41   :  { %1366 = vmatprep.subr.bf16.mxu1 %v1561_v25  ;;  %v1235_v23 = vcombine.low %v88_v18, %v92_v20  ;;  %v1593_v25 = vld [vmem:[#allocation5 + $0x1c8] sm:$0xff]   ;;  %v65_v32 = vld [vmem:[#allocation2 + $0x10] sm:$0xff]  ;;  %v70_v37 = vld [vmem:[#allocation2 + $0x38] sm:$0xff] }
  0x42   :  { %v69_v33 = vld [vmem:[#allocation2 + $0x30] sm:$0xff]  ;;  %v1215_v39 = vcombine.low %v66_v36, %v70_v37  ;;  %v82_v48 = vld [vmem:[#allocation2 + $0x98] sm:$0xff]  ;;  %v1602_v2 = vld [vmem:[#allocation7 + $0x28] sm:$0xff]  }
  0x43   :  { %1327 = vmatpush3.bf16.msra.mxu0 %v1562_v26  ;;  %v1594_v26 = vld [vmem:[#allocation5 + $0x108] sm:$0xff]   ;;  %v1213_v34 = vcombine.low %v65_v32, %v69_v33  ;;  %v86_v49 = vld [vmem:[#allocation2 + $0xb8] sm:$0xff]  ;;  %v1601_v1 = vld [vmem:[#allocation7 + $0x30] sm:$0xff]  }
  0x44   :  { %1367 = vmatpush3.bf16.msra.mxu1 %v1563_v27  ;;  %1328 = vmatprep.subr.bf16.mxu0 %v1564_v28  ;;  %v1595_v27 = vld [vmem:[#allocation5 + $0x188] sm:$0xff]   ;;  %v1596_v28 = vld [vmem:[#allocation5 + $0x140] sm:$0xff]   ;;  %v1600_v0 = vld [vmem:[#allocation7 + $0x38] sm:$0xff]  }
  0x45   :  { %1368 = vmatprep.subr.bf16.mxu1 %v1565_v29  ;;  %v1597_v29 = vld [vmem:[#allocation5 + $0x1c0] sm:$0xff]  }
  0x46   :  { %v1603_v3 = vld [vmem:[#allocation7 + $0x20] sm:$0xff]  }
  0x47   :  { %1329 = vmatpush3.bf16.msra.mxu0 %v1566_v30  ;;  %v1598_v30 = vld [vmem:[#allocation5 + $0x100] sm:$0xff]  }
  0x48   :  { %1369 = vmatpush3.bf16.msra.mxu1 %v1567_v31  ;;  %1394 = vmatprep.subr.bf16.mxu0 %v1568_v40  ;;  %v1599_v31 = vld [vmem:[#allocation5 + $0x180] sm:$0xff]   ;;  %v1216_v40 = vcombine.high %v66_v36, %v70_v37 }
  0x49   :  { %1434 = vmatprep.subr.bf16.mxu1 %v1569_v41  ;;  %v77_v41 = vld [vmem:[#allocation2 + $0x70] sm:$0xff] }
  0x4a   :  { %807 = vmatmul.mubr.bf16.vlgmr.msra.gmra.mxu0 %v1209_v35  ;;  %v1214_v35 = vcombine.high %v65_v32, %v69_v33 }
  0x4b   :  { %872 = vmatmul.mubr.bf16.vlgmr.msra.gmra.mxu1 %v1211_v38  ;;  %1395 = vmatpush3.bf16.msra.mxu0 %v1570_v42  ;;  %v73_v38 = vld [vmem:[#allocation2 + $0x50] sm:$0xff]  ;;  %v74_v42 = vld [vmem:[#allocation2 + $0x58] sm:$0xff] }
  0x4c   :  { %1435 = vmatpush3.bf16.msra.mxu1 %v1571_v43  ;;  %1396 = vmatprep.subr.bf16.mxu0 %v1572_v44  ;;  %v78_v43 = vld [vmem:[#allocation2 + $0x78] sm:$0xff]  ;;  %v1222_v44 = vcombine.high %v73_v38, %v77_v41 }
  0x4d   :  { %1436 = vmatprep.subr.bf16.mxu1 %v1573_v45  ;;  %814 = vmatprep.mubr.bf16.mxu0 %v1218_v50  ;;  %v1224_v45 = vcombine.high %v74_v42, %v78_v43  ;;  %v1221_v50 = vcombine.low %v73_v38, %v77_v41  ;;  %v1223_v51 = vcombine.low %v74_v42, %v78_v43  ;;  %v1764_v38 = vld [vmem:[%s1800_s2] ss:$0 sm:$0xff] }
  0x4e   :  { %879 = vmatprep.mubr.bf16.mxu1 %v1220_v54  ;;  %v89_v54 = vld [vmem:[#allocation2 + $0xd0] sm:$0xff] }
  0x4f   :  { %1397 = vmatpush3.bf16.msra.mxu0 %v1574_v46  ;;  %v81_v46 = vld [vmem:[#allocation2 + $0x90] sm:$0xff] }
  0x50   :  { %1437 = vmatpush3.bf16.msra.mxu1 %v1575_v47  ;;  %1398 = vmatprep.subr.bf16.mxu0 %v1576_v56  ;;  %v85_v47 = vld [vmem:[#allocation2 + $0xb0] sm:$0xff]  ;;  %v90_v56 = vld [vmem:[#allocation2 + $0xd8] sm:$0xff] }
  0x51   :  { %1438 = vmatprep.subr.bf16.mxu1 %v1577_v57  ;;  %v1230_v52 = vcombine.high %v81_v46, %v85_v47  ;;  %v94_v57 = vld [vmem:[#allocation2 + $0xf8] sm:$0xff] }
  0x52   :  { %815 = vmatmul.mubr.bf16.gmra.mxu0 %v1217_v53  ;;  %v1232_v53 = vcombine.high %v82_v48, %v86_v49 }
  0x53   :  { %880 = vmatmul.mubr.bf16.gmra.mxu1 %v1219_v55  ;;  %1399 = vmatpush3.bf16.msra.mxu0 %v1578_v58  ;;  %v93_v55 = vld [vmem:[#allocation2 + $0xf0] sm:$0xff]  ;;  %v1229_v58 = vcombine.low %v81_v46, %v85_v47 }
  0x54   :  { %1439 = vmatpush3.bf16.msra.mxu1 %v1579_v59  ;;  %1400 = vmatprep.subr.bf16.mxu0 %v1580_v60  ;;  %v1231_v59 = vcombine.low %v82_v48, %v86_v49  ;;  %v1238_v60 = vcombine.high %v89_v54, %v93_v55 }
  0x55   :  { %1440 = vmatprep.subr.bf16.mxu1 %v1581_v61  ;;  %822 = vmatprep.mubr.bf16.mxu0 %v1226_v4  ;;  %v1240_v61 = vcombine.high %v90_v56, %v94_v57  ;;  %v1604_v4 = vld [vmem:[#allocation7 + $0x18] sm:$0xff]  }
  0x56   :  { %887 = vmatprep.mubr.bf16.mxu1 %v1228_v5  ;;  %v1605_v5 = vld [vmem:[#allocation7 + $0x10] sm:$0xff]  }
  0x57   :  { %1401 = vmatpush3.bf16.msra.mxu0 %v1582_v62  ;;  %v1237_v62 = vcombine.low %v89_v54, %v93_v55 }
  0x58   :  { %1441 = vmatpush3.bf16.msra.mxu1 %v1583_v63  ;;  %1402 = vmatprep.subr.bf16.mxu0 %v1584_v8  ;;  %v1239_v63 = vcombine.low %v90_v56, %v94_v57 }
  0x59   :  { %1442 = vmatprep.subr.bf16.mxu1 %v1585_v9 }
  0x5a   :  { %823 = vmatmul.mubr.bf16.gmra.mxu0 %v1225_v6  ;;  %v1606_v6 = vld [vmem:[#allocation7 + $0x8] sm:$0xff]  }
  0x5b   :  { %888 = vmatmul.mubr.bf16.gmra.mxu1 %v1227_v7  ;;  %1403 = vmatpush3.bf16.msra.mxu0 %v1586_v10  ;;  %v1607_v7 = vld [vmem:[#allocation7] sm:$0xff]  }
  0x5c   :  { %1443 = vmatpush3.bf16.msra.mxu1 %v1587_v11  ;;  %1404 = vmatprep.subr.bf16.mxu0 %v1588_v12 }
  0x5d   :  { %1444 = vmatprep.subr.bf16.mxu1 %v1589_v13  ;;  %830 = vmatprep.mubr.bf16.mxu0 %v1234_v19 }
  0x5e   :  { %895 = vmatprep.mubr.bf16.mxu1 %v1236_v22 }
  0x5f   :  { %1405 = vmatpush3.bf16.msra.mxu0 %v1590_v14 }
  0x60   :  { %1445 = vmatpush3.bf16.msra.mxu1 %v1591_v15  ;;  %1406 = vmatprep.subr.bf16.mxu0 %v1592_v24 }
  0x61   :  { %1446 = vmatprep.subr.bf16.mxu1 %v1593_v25 }
  0x62   :  { %831 = vmatmul.mubr.bf16.gmra.mxu0 %v1233_v21 }
  0x63   :  { %896 = vmatmul.mubr.bf16.gmra.mxu1 %v1235_v23  ;;  %1407 = vmatpush3.bf16.msra.mxu0 %v1594_v26 }
  0x64   :  { %1447 = vmatpush3.bf16.msra.mxu1 %v1595_v27  ;;  %1408 = vmatprep.subr.bf16.mxu0 %v1596_v28 }
  0x65   :  { %1448 = vmatprep.subr.bf16.mxu1 %v1597_v29  ;;  %936 = vmatprep.mubr.bf16.mxu0 %v1214_v35 }
  0x66   :  { %1001 = vmatprep.mubr.bf16.mxu1 %v1216_v40 }
  0x67   :  { %1409 = vmatpush3.bf16.msra.mxu0 %v1598_v30 }
  0x68   :  { %1449 = vmatpush3.bf16.msra.mxu1 %v1599_v31  ;;  %1486 = vmatprep.subr.bf16.mxu0 %v1600_v0 }
  0x69   :  { %1510 = vmatprep.subr.bf16.mxu1 %v1600_v0 }
  0x6a   :  { %937 = vmatmul.mubr.bf16.vlgmr.msra.gmra.mxu0 %v1213_v34 }
  0x6b   :  { %1002 = vmatmul.mubr.bf16.vlgmr.msra.gmra.mxu1 %v1215_v39  ;;  %944 = vmatprep.mubr.bf16.mxu0 %v1222_v44 }
  0x6c   :  { %1009 = vmatprep.mubr.bf16.mxu1 %v1224_v45  ;;  %1487 = vmatpush3.bf16.msra.mxu0 %v1600_v0 }
  0x6d   :  { %1518 = vmatpush3.bf16.msra.mxu1 %v1600_v0  ;;  %1488 = vmatprep.subr.bf16.mxu0 %v1601_v1 }
  0x6e   :  { %1511 = vmatprep.subr.bf16.mxu1 %v1601_v1 }
  0x70   :  { %1489 = vmatpush3.bf16.msra.mxu0 %v1601_v1 }
  0x71   :  { %1519 = vmatpush3.bf16.msra.mxu1 %v1601_v1  ;;  %1490 = vmatprep.subr.bf16.mxu0 %v1602_v2 }
  0x72   :  { %945 = vmatmul.mubr.bf16.gmra.mxu0 %v1221_v50  ;;  %1512 = vmatprep.subr.bf16.mxu1 %v1602_v2 }
  0x73   :  { %1010 = vmatmul.mubr.bf16.gmra.mxu1 %v1223_v51  ;;  %952 = vmatprep.mubr.bf16.mxu0 %v1230_v52 }
  0x74   :  { %1017 = vmatprep.mubr.bf16.mxu1 %v1232_v53  ;;  %1491 = vmatpush3.bf16.msra.mxu0 %v1602_v2 }
  0x75   :  { %1520 = vmatpush3.bf16.msra.mxu1 %v1602_v2  ;;  %1492 = vmatprep.subr.bf16.mxu0 %v1603_v3 }
  0x76   :  { %1513 = vmatprep.subr.bf16.mxu1 %v1603_v3 }
  0x78   :  { %1493 = vmatpush3.bf16.msra.mxu0 %v1603_v3 }
  0x79   :  { %1521 = vmatpush3.bf16.msra.mxu1 %v1603_v3  ;;  %1494 = vmatprep.subr.bf16.mxu0 %v1604_v4 }
  0x7a   :  { %953 = vmatmul.mubr.bf16.gmra.mxu0 %v1229_v58  ;;  %1514 = vmatprep.subr.bf16.mxu1 %v1604_v4 }
  0x7b   :  { %1018 = vmatmul.mubr.bf16.gmra.mxu1 %v1231_v59  ;;  %960 = vmatprep.mubr.bf16.mxu0 %v1238_v60 }
  0x7c   :  { %1025 = vmatprep.mubr.bf16.mxu1 %v1240_v61  ;;  %1495 = vmatpush3.bf16.msra.mxu0 %v1604_v4 }
  0x7d   :  { %1522 = vmatpush3.bf16.msra.mxu1 %v1604_v4  ;;  %1496 = vmatprep.subr.bf16.mxu0 %v1605_v5 }
  0x7e   :  { %1515 = vmatprep.subr.bf16.mxu1 %v1605_v5 }
  0x80   :  { %1497 = vmatpush3.bf16.msra.mxu0 %v1605_v5 }
  0x81   :  { %1523 = vmatpush3.bf16.msra.mxu1 %v1605_v5  ;;  %1498 = vmatprep.subr.bf16.mxu0 %v1606_v6 }
  0x82   :  { %961 = vmatmul.mubr.bf16.gmra.mxu0 %v1237_v62  ;;  %1516 = vmatprep.subr.bf16.mxu1 %v1606_v6 }
  0x83   :  { %1026 = vmatmul.mubr.bf16.gmra.mxu1 %v1239_v63 }
  0x84   :  { %1499 = vmatpush3.bf16.msra.mxu0 %v1606_v6 }
  0x85   :  { %1524 = vmatpush3.bf16.msra.mxu1 %v1606_v6  ;;  %1500 = vmatprep.subr.bf16.mxu0 %v1607_v7 }
  0x86   :  { %1517 = vmatprep.subr.bf16.mxu1 %v1607_v7 }
  0x88   :  { %1501 = vmatpush3.bf16.msra.mxu0 %v1607_v7 }
  0x89   :  { %1525 = vmatpush3.bf16.msra.mxu1 %v1607_v7 }
 0x10a   :  { %v1330_v8 = vpop.f32.mrf.mxu0 }
 0x10b   :  { %v1370_v9 = vpop.f32.mrf.mxu1 }
 0x10c   :  { %v1331_v10 = vpop.f32.mrf.mxu0 }
 0x10d   :  { %v1371_v11 = vpop.f32.mrf.mxu1  ;;  %v1332_v36 = vadd.f32 %v1331_v10, %v1330_v8 }
 0x10e   :  { %v1333_v12 = vpop.f32.mrf.mxu0  ;;  %v1372_v45 = vadd.f32 %v1371_v11, %v1370_v9 }
 0x10f   :  { %v1373_v13 = vpop.f32.mrf.mxu1  ;;  %v809_v42 = vadd.f32 %v1332_v36, %v1764_v38 }
 0x110   :  { %v1334_v14 = vpop.f32.mrf.mxu0 }
 0x111   :  { %v1374_v15 = vpop.f32.mrf.mxu1  ;;  %v1335_v43 = vadd.f32 %v1334_v14, %v1333_v12  ;;  %v874_v48 = vadd.f32 %v1372_v45, %v809_v42 }
 0x112   :  { %v1336_v16 = vpop.f32.mrf.mxu0  ;;  %v1375_v54 = vadd.f32 %v1374_v15, %v1373_v13 }
 0x113   :  { %v1376_v17 = vpop.f32.mrf.mxu1  ;;  %v812_v49 = vadd.f32 %v1335_v43, %v1764_v38 }
 0x114   :  { %v1337_v18 = vpop.f32.mrf.mxu0 }
 0x115   :  { %v1377_v19 = vpop.f32.mrf.mxu1  ;;  %v1338_v50 = vadd.f32 %v1337_v18, %v1336_v16  ;;  %v877_v59 = vadd.f32 %v1375_v54, %v812_v49 }
 0x116   :  { %v1339_v20 = vpop.f32.mrf.mxu0  ;;  %v1378_v1 = vadd.f32 %v1377_v19, %v1376_v17 }
 0x117   :  { %v1379_v21 = vpop.f32.mrf.mxu1  ;;  %v817_v60 = vadd.f32 %v1338_v50, %v1764_v38 }
 0x118   :  { %v1340_v22 = vpop.f32.mrf.mxu0 }
 0x119   :  { %v1380_v23 = vpop.f32.mrf.mxu1  ;;  %v1341_v57 = vadd.f32 %v1340_v22, %v1339_v20  ;;  %v882_v8 = vadd.f32 %v1378_v1, %v817_v60 }
 0x11a   :  { %v1342_v24 = vpop.f32.mrf.mxu0  ;;  %v1381_v13 = vadd.f32 %v1380_v23, %v1379_v21 }
 0x11b   :  { %v1743_v25 = vpop.f32.mrf.mxu1  ;;  %v820_v6 = vadd.f32 %v1341_v57, %v1764_v38 }
 0x11c   :  { %v1343_v26 = vpop.f32.mrf.mxu0 }
 0x11d   :  { %v1745_v27 = vpop.f32.mrf.mxu1  ;;  %v1344_v9 = vadd.f32 %v1343_v26, %v1342_v24  ;;  %v885_v22 = vadd.f32 %v1381_v13, %v820_v6 }
 0x11e   :  { %v1345_v28 = vpop.f32.mrf.mxu0  ;;  %v1384_v24 = vadd.f32 %v1745_v27, %v1743_v25 }
 0x11f   :  { %v1747_v29 = vpop.f32.mrf.mxu1  ;;  %v825_v36 = vadd.f32 %v1344_v9, %v1764_v38 }
 0x120   :  { %v1346_v30 = vpop.f32.mrf.mxu0 }
 0x121   :  { %v1749_v31 = vpop.f32.mrf.mxu1  ;;  %v1347_v17 = vadd.f32 %v1346_v30, %v1345_v28  ;;  %v890_v49 = vadd.f32 %v1384_v24, %v825_v36 }
 0x122   :  { %v1751_v32 = vpop.f32.mrf.mxu0 }
 0x123   :  { %v1753_v33 = vpop.f32.mrf.mxu1 }
 0x124   :  { %v1755_v34 = vpop.f32.mrf.mxu0 }
 0x125   :  { %v1757_v35 = vpop.f32.mrf.mxu1  ;;  %v1350_v28 = vadd.f32 %v1755_v34, %v1751_v32 }
 0x126   :  { %v1759_v37 = vpop.f32.mrf.mxu0 }
 0x127   :  { %v1766_v39 = vpop.f32.mrf.mxu1 }
 0x128   :  { %v1768_v40 = vpop.f32.mrf.mxu0 }
 0x129   :  { %v1770_v41 = vpop.f32.mrf.mxu1  ;;  %v1353_v32 = vadd.f32 %v1768_v40, %v1759_v37 }
 0x12a   :  { %v1410_v44 = vpop.f32.mrf.mxu0 }
 0x12b   :  { %v1450_v46 = vpop.f32.mrf.mxu1 }
 0x12c   :  { %v1411_v47 = vpop.f32.mrf.mxu0 }
 0x12d   :  { %v1412_v51 = vadd.f32 %v1411_v47, %v1410_v44  ;;  %v1451_v52 = vpop.f32.mrf.mxu1 }
 0x12e   :  { %v1413_v53 = vpop.f32.mrf.mxu0  ;;  %v1452_v61 = vadd.f32 %v1451_v52, %v1450_v46 }
 0x12f   :  { %v939_v55 = vadd.f32 %v1412_v51, %v874_v48  ;;  %v1453_v56 = vpop.f32.mrf.mxu1  ;;  %v828_v48 = vadd.f32 %v1347_v17, %v1764_v38 }
 0x130   :  { %v1414_v58 = vpop.f32.mrf.mxu0 }
 0x131   :  { %v1415_v62 = vadd.f32 %v1414_v58, %v1413_v53  ;;  %v1454_v63 = vpop.f32.mrf.mxu1  ;;  %v1004_v2 = vadd.f32 %v1452_v61, %v939_v55  ;;  %v1387_v53 = vadd.f32 %v1749_v31, %v1747_v29  ;;  %v833_v58 = vadd.f32 %v1350_v28, %v1764_v38 }
 0x132   :  { %v1416_v0 = vpop.f32.mrf.mxu0  ;;  %v1455_v4 = vadd.f32 %v1454_v63, %v1453_v56  ;;  %v1390_v29 = vadd.f32 %v1757_v35, %v1753_v33 }
 0x133   :  { %v942_v3 = vadd.f32 %v1415_v62, %v877_v59  ;;  %v1456_v5 = vpop.f32.mrf.mxu1  ;;  %v1034_v15 = vmax.f32 %v1004_v2, 0.0  ;;  %v893_v57 = vadd.f32 %v1387_v53, %v828_v48 }
 0x134   :  { %v1417_v7 = vpop.f32.mrf.mxu0 }
 0x135   :  { %v1007_v10 = vadd.f32 %v1455_v4, %v942_v3  ;;  %v1418_v11 = vadd.f32 %v1417_v7, %v1416_v0  ;;  %v1457_v12 = vpop.f32.mrf.mxu1  ;;  %v898_v4 = vadd.f32 %v1390_v29, %v833_v58 }
 0x136   :  { %v1419_v14 = vpop.f32.mrf.mxu0  ;;  %v1458_v42 = vadd.f32 %v1457_v12, %v1456_v5  ;;  %v836_v5 = vadd.f32 %v1353_v32, %v1764_v38 }
 0x137   :  { %v1035_v16 = vmax.f32 %v1007_v10, 0.0  ;;  %v947_v18 = vadd.f32 %v1418_v11, %v882_v8  ;;  %v1459_v20 = vpop.f32.mrf.mxu1  ;;  %v1393_v8 = vadd.f32 %v1770_v41, %v1766_v39  ;;  %v1305_v39 = vld [vmem:[%s1802_s4] ss:$0 sm:$0xff]  ;;  %s1195_s4 = sshll.u32 %s1701_s12, 4  ;;  %s1196_s4 = int_to_ptr.vmem [resolvable:$true] %s1195_s4 }
 0x138   :  { %v1420_v19 = vpop.f32.mrf.mxu0  ;;  %s1668_s13 = scalar_lea.vmem %s1196_s4, 1024  ;;  %p1673_p2 = scmp.lt.s32.totalorder %s1196_s4, %s1196_s4 }
 0x139   :  { %v1421_v43 = vadd.f32 %v1420_v19, %v1419_v14  ;;  %v1460_v44 = vpop.f32.mrf.mxu1  ;;  %v1042_v45 = vpack.c.bf16 %v1035_v16, %v1034_v15  ;;  %v1012_v26 = vadd.f32 %v1458_v42, %v947_v18  ;;  %v901_v12 = vadd.f32 %v1393_v8, %v836_v5  ;;  %p1669_p1 = scmp.ne.s32.totalorder %s1196_s4, %s1668_s13  ;;  %p1674_p3 = scmp.lt.s32.totalorder %s1668_s13, %s1668_s13 }
 0x13a   :  { %v1422_v46 = vpop.f32.mrf.mxu0  ;;  %v1461_v23 = vadd.f32 %v1460_v44, %v1459_v20 }
 0x13b   :  { %v950_v21 = vadd.f32 %v1421_v43, %v885_v22  ;;  %v1462_v47 = vpop.f32.mrf.mxu1  ;;  %1502 = vmatprep.mubr.bf16.mxu0 %v1042_v45  ;;  %v1036_v25 = vmax.f32 %v1012_v26, 0.0  ;;  %p1675_p4 = por %p1674_p3, %p1673_p2 }
 0x13c   :  { %v1423_v30 = vpop.f32.mrf.mxu0 }
 0x13d   :  { %v1015_v50 = vadd.f32 %v1461_v23, %v950_v21  ;;  %v1424_v51 = vadd.f32 %v1423_v30, %v1422_v46  ;;  %v1463_v52 = vpop.f32.mrf.mxu1  ;;  %p1676_p5 = pnand %p1675_p4, %p1669_p1 }
 0x13e   :  { %v1425_v54 = vpop.f32.mrf.mxu0  ;;  %v1464_v60 = vadd.f32 %v1463_v52, %v1462_v47 }
 0x13f   :  { %v1037_v27 = vmax.f32 %v1015_v50, 0.0  ;;  %v955_v55 = vadd.f32 %v1424_v51, %v890_v49  ;;  %v1465_v56 = vpop.f32.mrf.mxu1 }
 0x140   :  { %v1426_v59 = vpop.f32.mrf.mxu0 }
 0x141   :  { %v1043_v34 = vpack.c.bf16 %v1037_v27, %v1036_v25  ;;  %v1427_v61 = vadd.f32 %v1426_v59, %v1425_v54  ;;  %v1466_v62 = vpop.f32.mrf.mxu1  ;;  %v1020_v31 = vadd.f32 %v1464_v60, %v955_v55 }
 0x142   :  { %v1428_v63 = vpop.f32.mrf.mxu0  ;;  %v1467_v1 = vadd.f32 %v1466_v62, %v1465_v56 }
 0x143   :  { %v958_v0 = vadd.f32 %v1427_v61, %v893_v57  ;;  %v1468_v2 = vpop.f32.mrf.mxu1  ;;  %1503 = vmatmul.mubr.bf16.vlgmr.msra.gmra.mxu0 %v1043_v34  ;;  %v1038_v9 = vmax.f32 %v1020_v31, 0.0 }
 0x144   :  { %v1429_v3 = vpop.f32.mrf.mxu0 }
 0x145   :  { %v1023_v6 = vadd.f32 %v1467_v1, %v958_v0  ;;  %v1430_v7 = vadd.f32 %v1429_v3, %v1428_v63  ;;  %v1469_v37 = vpop.f32.mrf.mxu1 }
 0x146   :  { %v1431_v40 = vpop.f32.mrf.mxu0  ;;  %v1470_v13 = vadd.f32 %v1469_v37, %v1468_v2 }
 0x147   :  { %v1039_v10 = vmax.f32 %v1023_v6, 0.0  ;;  %v963_v11 = vadd.f32 %v1430_v7, %v898_v4  ;;  %v1471_v33 = vpop.f32.mrf.mxu1 }
 0x148   :  { %v1432_v35 = vpop.f32.mrf.mxu0 }
 0x149   :  { %v1433_v14 = vadd.f32 %v1432_v35, %v1431_v40  ;;  %v1472_v15 = vpop.f32.mrf.mxu1  ;;  %v1044_v16 = vpack.c.bf16 %v1039_v10, %v1038_v9  ;;  %v1028_v18 = vadd.f32 %v1470_v13, %v963_v11 }
 0x14a   :  { %v1473_v38 = vadd.f32 %v1472_v15, %v1471_v33 }
 0x14b   :  { %v966_v20 = vadd.f32 %v1433_v14, %v901_v12  ;;  %1506 = vmatprep.mubr.bf16.mxu1 %v1044_v16  ;;  %v1040_v17 = vmax.f32 %v1028_v18, 0.0 }
 0x14d   :  { %v1031_v22 = vadd.f32 %v1473_v38, %v966_v20 }
 0x14f   :  { %v1041_v19 = vmax.f32 %v1031_v22, 0.0 }
 0x151   :  { %v1045_v36 = vpack.c.bf16 %v1041_v19, %v1040_v17 }
 0x153   :  { %1507 = vmatmul.mubr.bf16.vlgmr.msra.gmra.mxu1 %v1045_v36 }
 0x203   :  { %v1504_v41 = vpop.f32.mrf.mxu0 }
 0x204   :  { %v1160_v42 = vadd.f32 %v1504_v41, %v1305_v39 }
 0x205   :  { %v1151_v43 = vpop.f32.mrf.mxu0 }
 0x206   :  { %1184 = vst [vmem:[#allocation8 + $0x10] sm:$0xff] %v1160_v42  ;;  %v1152_v44 = vadd.f32 %v1305_v39, %v1151_v43 }
 0x207   :  { %v1505_v45 = vpop.f32.mrf.mxu0 }
 0x208   :  { %1182 = vst [vmem:[#allocation8] sm:$0xff] %v1152_v44  ;;  %v1163_v46 = vadd.f32 %v1505_v45, %v1305_v39 }
 0x209   :  { %v1154_v24 = vpop.f32.mrf.mxu0 }
 0x20a   :  { %1185 = vst [vmem:[#allocation8 + $0x18] sm:$0xff] %v1163_v46  ;;  %v1155_v26 = vadd.f32 %v1305_v39, %v1154_v24 }
 0x20c   :  { %1183 = vst [vmem:[#allocation8 + $0x8] sm:$0xff] %v1155_v26 }
 0x213   :  { %v1508_v21 = vpop.f32.mrf.mxu1 }
 0x214   :  { %v1176_v23 = vadd.f32 %v1508_v21, %v1305_v39 }
 0x215   :  { %v1167_v47 = vpop.f32.mrf.mxu1 }
 0x216   :  { %1188 = vst [vmem:[#allocation8 + $0x30] sm:$0xff] %v1176_v23  ;;  %v1168_v48 = vadd.f32 %v1305_v39, %v1167_v47 }
 0x217   :  { %v1509_v28 = vpop.f32.mrf.mxu1 }
 0x218   :  { %1186 = vst [vmem:[#allocation8 + $0x20] sm:$0xff] %v1168_v48  ;;  %v1179_v30 = vadd.f32 %v1509_v28, %v1305_v39 }
 0x219   :  { %v1170_v49 = vpop.f32.mrf.mxu1 }
 0x21a   :  { %1189 = vst [vmem:[#allocation8 + $0x38] sm:$0xff] %v1179_v30  ;;  %v1171_v50 = vadd.f32 %v1305_v39, %v1170_v49 }
 0x21c   :  { %1187 = vst [vmem:[#allocation8 + $0x28] sm:$0xff] %v1171_v50 }
 0x21d   :  { %1679 = shalt.err (!%p1676_p5)
}
 0x21e   :  { %s1702_s14 = smov 128   ;;  %s1703_s15 = smov 8  }
 0x21f   :  { %1201 = dma.vmem_to_hbm [thread:$0]  %s1196_s4, 1024, %s1803_s5, [#allocation4], %s1702_s14, %s1702_s14, %s1703_s15  }
 0x220   :  { %1692 = dma.done.wait [#allocation4], 1024  }
 0x221   :  { %1693 = vsyncadd [#allocation4], 4294966272 }
 0x222   :  { %1205 = vsyncpa [#allocation3], 1 }
 0x223   :  { %1206 = vsyncpa [#allocation6], 1 }
 0x224   :  { %1207 = vsyncpa [#allocation4], 1 }

</bundles_post_ra>
